<compile_context>
chip_gen: v5e
topology: v5e:2x2
jax: 0.10.0
libtpu: 0.0.40
codegen_flags: <defaults>
</compile_context>

<pallas_src>
import jax
import jax.numpy as jnp
from jax.experimental import pallas as pl
from jax.experimental.pallas import tpu as pltpu

LN_EPS = 1e-5  # torch.nn.LayerNorm default


def _round_up(x, m):
    return (x + m - 1) // m * m


def _choose_tile_n(H, Dp, in_dtype_bytes,
                   budget_bytes=16 * 1024 * 1024, max_tile=2048):
    """Largest power-of-two row tile whose pipelined buffers + f32 temps fit the budget.

    Per row (rough): f32 temps (x, z, y, h) ~ (3H + Dp)*4 bytes, plus double-buffered
    input + output tiles in the activation dtype ~ 4*H*itemsize bytes.
    Budget of 16 MiB leaves ample headroom under v7x's 32 MiB scoped / 64 MiB physical.
    """
    per_row = (3 * H + Dp) * 4 + 4 * H * in_dtype_bytes
    tile = max_tile
    while tile > 8 and tile * per_row > budget_bytes:
        tile //= 2
    return tile


def _adapter_controller_kernel(
    x_ref,          # (TILE_N, H)
    pre_g_ref,      # (1, H)
    pre_b_ref,      # (1, H)
    dw_ref,         # (H, Dp)   (zero-padded cols D..Dp)
    db_ref,         # (1, Dp)   (zero-padded)
    uw_ref,         # (Dp, H)   (zero-padded rows D..Dp)
    ub_ref,         # (1, H)
    post_g_ref,     # (1, H)
    post_b_ref,     # (1, H)
    o_ref,          # (TILE_N, H)
):
    x = x_ref[...].astype(jnp.float32)

    # --- pre LayerNorm over last dim ---
    mu = jnp.mean(x, axis=-1, keepdims=True)
    xc = x - mu
    var = jnp.mean(xc * xc, axis=-1, keepdims=True)
    z = xc * jax.lax.rsqrt(var + LN_EPS)           # rsqrt -> EUP slot (free vs VPU)
    z = z * pre_g_ref[...].astype(jnp.float32) + pre_b_ref[...].astype(jnp.float32)

    # --- Adapter: down_sampler -> ReLU -> up_sampler ---
    h = jnp.dot(z, dw_ref[...].astype(jnp.float32),
                preferred_element_type=jnp.float32) + db_ref[...].astype(jnp.float32)
    h = jnp.maximum(h, 0.0)                        # non_linearity = "relu"
    y = jnp.dot(h, uw_ref[...].astype(jnp.float32),
                preferred_element_type=jnp.float32) + ub_ref[...].astype(jnp.float32)

    # --- post LayerNorm over last dim ---
    mu2 = jnp.mean(y, axis=-1, keepdims=True)
    yc = y - mu2
    var2 = jnp.mean(yc * yc, axis=-1, keepdims=True)
    y = yc * jax.lax.rsqrt(var2 + LN_EPS)
    y = y * post_g_ref[...].astype(jnp.float32) + post_b_ref[...].astype(jnp.float32)

    # --- residual ---
    o_ref[...] = (y + x).astype(o_ref.dtype)


@jax.jit
def adapter_controller_forward(x_nsh, params):
    """x_nsh: (batch, seq, hidden). params: dict for the selected task's adapter."""
    B, S, H = x_nsh.shape
    N = B * S
    dtype = x_nsh.dtype
    x2d = x_nsh.reshape(N, H)

    pre_g = params["pre_ln_gamma"].reshape(1, H)
    pre_b = params["pre_ln_beta"].reshape(1, H)
    dw = params["down_w"]                      # (H, D)
    db = params["down_b"]                      # (D,)
    uw = params["up_w"]                        # (D, H)
    ub = params["up_b"].reshape(1, H)
    post_g = params["post_ln_gamma"].reshape(1, H)
    post_b = params["post_ln_beta"].reshape(1, H)

    D = dw.shape[1]
    # Zero-pad the bottleneck dim to a lane-friendly multiple of 128 (exact math:
    # padded db entries and padded uw rows are zero, ReLU(0)*0 contributes nothing).
    Dp = _round_up(max(D, 128), 128)
    dw_p = jnp.zeros((H, Dp), dw.dtype).at[:, :D].set(dw)
    db_p = jnp.zeros((1, Dp), db.dtype).at[:, :D].set(db.reshape(1, D))
    uw_p = jnp.zeros((Dp, H), uw.dtype).at[:D, :].set(uw)

    # Row tiling: pick the largest tile that fits the VMEM budget, pad N if needed.
    tile_n = _choose_tile_n(H, Dp, jnp.dtype(dtype).itemsize)
    tile_n = min(tile_n, _round_up(N, 8))      # don't over-tile tiny inputs
    n_pad = _round_up(N, tile_n)
    if n_pad != N:
        x2d = jnp.pad(x2d, ((0, n_pad - N), (0, 0)))
    grid = (n_pad // tile_n,)

    row_spec = pl.BlockSpec((tile_n, H), lambda i: (i, 0))
    const = lambda shape: pl.BlockSpec(shape, lambda i: (0, 0))  # VMEM-resident params

    out = pl.pallas_call(
        _adapter_controller_kernel,
        out_shape=jax.ShapeDtypeStruct((n_pad, H), dtype),
        grid=grid,
        in_specs=[
            row_spec,
            const((1, H)), const((1, H)),
            const((H, Dp)), const((1, Dp)),
            const((Dp, H)), const((1, H)),
            const((1, H)), const((1, H)),
        ],
        out_specs=row_spec,
        input_output_aliases={0: 0},
        compiler_params=pltpu.CompilerParams(
            dimension_semantics=("parallel",),      # shard rows across TCs on v7x
            vmem_limit_bytes=32 * 1024 * 1024,      # explicit, with headroom on v7x
        ),
    )(x2d, pre_g, pre_b, dw_p, db_p, uw_p, ub, post_g, post_b)

    return out[:N].reshape(B, S, H)


def make_params(key, input_dim, reduction_factor, weight_init_range=0.01):
    """Deterministic parameter init matching the PyTorch module's __init__."""
    down = input_dim // reduction_factor
    k1, k2 = jax.random.split(key, 2)
    # nn.Linear weight is (out, in); store transposed (in, out) for x @ W.
    down_w = (jax.random.normal(k1, (down, input_dim)) * weight_init_range).T
    up_w = (jax.random.normal(k2, (input_dim, down)) * weight_init_range).T
    return {
        "pre_ln_gamma": jnp.ones((input_dim,), jnp.float32),
        "pre_ln_beta": jnp.zeros((input_dim,), jnp.float32),
        "down_w": down_w.astype(jnp.float32),
        "down_b": jnp.zeros((down,), jnp.float32),
        "up_w": up_w.astype(jnp.float32),
        "up_b": jnp.zeros((input_dim,), jnp.float32),
        "post_ln_gamma": jnp.ones((input_dim,), jnp.float32),
        "post_ln_beta": jnp.zeros((input_dim,), jnp.float32),
    }


def reference_forward(x, p):
    """Pure-JAX reference (same math as the PyTorch forward)."""
    def ln(v, g, b):
        mu = jnp.mean(v, -1, keepdims=True)
        var = jnp.mean((v - mu) ** 2, -1, keepdims=True)
        return (v - mu) / jnp.sqrt(var + LN_EPS) * g + b

    z = ln(x, p["pre_ln_gamma"], p["pre_ln_beta"])
    h = jnp.maximum(z @ p["down_w"] + p["down_b"], 0.0)
    y = h @ p["up_w"] + p["up_b"]
    y = ln(y, p["post_ln_gamma"], p["post_ln_beta"])
    return y + x


if __name__ == "__main__":
    key = jax.random.PRNGKey(0)
    kx, kp_a, kp_b = jax.random.split(key, 3)

    batch, seq, hidden = 2, 8, 32
    reduction_factor = 4

    # One adapter per task; forward selects the adapter for the given task.
    # TODO(synk): enable/disable_adapters (requires_grad bookkeeping) is host-side
    # training logic with no kernel equivalent; only the forward math is implemented.
    tasks = ["task_a", "task_b"]
    adapters = {
        "task_a": make_params(kp_a, hidden, reduction_factor),
        "task_b": make_params(kp_b, hidden, reduction_factor),
    }

    x = jax.random.normal(kx, (batch, seq, hidden), dtype=jnp.float32)

    task = "task_a"  # task_to_adapter maps task -> itself
    out = adapter_controller_forward(x, adapters[task])
    out = jax.block_until_ready(out)

    ref = reference_forward(x, adapters[task])
    assert out.shape == x.shape
    assert jnp.allclose(out, ref, atol=1e-4, rtol=1e-4)

    print("KERNEL_OK")
</pallas_src>

<mosaic_0001>
module attributes {stable_mosaic.version = 11 : i64} {
  func.func @_adapter_controller_kernel(%arg0: i32, %arg1: memref<16x32xf32, #tpu.memory_space<vmem>>, %arg2: memref<1x32xf32, #tpu.memory_space<vmem>>, %arg3: memref<1x32xf32, #tpu.memory_space<vmem>>, %arg4: memref<32x128xf32, #tpu.memory_space<vmem>>, %arg5: memref<1x128xf32, #tpu.memory_space<vmem>>, %arg6: memref<128x32xf32, #tpu.memory_space<vmem>>, %arg7: memref<1x32xf32, #tpu.memory_space<vmem>>, %arg8: memref<1x32xf32, #tpu.memory_space<vmem>>, %arg9: memref<1x32xf32, #tpu.memory_space<vmem>>, %arg10: memref<16x32xf32, #tpu.memory_space<vmem>>) attributes {dimension_semantics = [#tpu.dimension_semantics<parallel>], iteration_bounds = array<i64: 1>, scalar_prefetch = 0 : i64, scratch_operands = 0 : i64, tpu.core_type = #tpu.core_type<tc>, window_params = [{transform_indices = @transform_0, window_bounds = array<i64: 16, 32>}, {pipeline_mode = #tpu.pipeline_mode<synchronous>, transform_indices = @transform_1, window_bounds = array<i64: 1, 32>}, {pipeline_mode = #tpu.pipeline_mode<synchronous>, transform_indices = @transform_2, window_bounds = array<i64: 1, 32>}, {pipeline_mode = #tpu.pipeline_mode<synchronous>, transform_indices = @transform_3, window_bounds = array<i64: 32, 128>}, {pipeline_mode = #tpu.pipeline_mode<synchronous>, transform_indices = @transform_4, window_bounds = array<i64: 1, 128>}, {pipeline_mode = #tpu.pipeline_mode<synchronous>, transform_indices = @transform_5, window_bounds = array<i64: 128, 32>}, {pipeline_mode = #tpu.pipeline_mode<synchronous>, transform_indices = @transform_6, window_bounds = array<i64: 1, 32>}, {pipeline_mode = #tpu.pipeline_mode<synchronous>, transform_indices = @transform_7, window_bounds = array<i64: 1, 32>}, {pipeline_mode = #tpu.pipeline_mode<synchronous>, transform_indices = @transform_8, window_bounds = array<i64: 1, 32>}, {transform_indices = @transform_9, window_bounds = array<i64: 16, 32>}]} {
    %c0 = arith.constant 0 : index
    %c0_0 = arith.constant 0 : index
    %0 = vector.load %arg1[%c0, %c0_0] : memref<16x32xf32, #tpu.memory_space<vmem>>, vector<16x32xf32>
    %cst = arith.constant dense<0.000000e+00> : vector<16xf32>
    %1 = vector.multi_reduction <add>, %0, %cst [1] : vector<16x32xf32> to vector<16xf32>
    %2 = vector.shape_cast %1 : vector<16xf32> to vector<16x1xf32>
    %cst_1 = arith.constant 3.200000e+01 : f32
    %3 = vector.broadcast %cst_1 : f32 to vector<16x1xf32>
    %4 = arith.divf %2, %3 : vector<16x1xf32>
    %5 = vector.broadcast %4 : vector<16x1xf32> to vector<16x32xf32>
    %6 = arith.subf %0, %5 : vector<16x32xf32>
    %7 = arith.mulf %6, %6 : vector<16x32xf32>
    %cst_2 = arith.constant dense<0.000000e+00> : vector<16xf32>
    %8 = vector.multi_reduction <add>, %7, %cst_2 [1] : vector<16x32xf32> to vector<16xf32>
    %9 = vector.shape_cast %8 : vector<16xf32> to vector<16x1xf32>
    %cst_3 = arith.constant 3.200000e+01 : f32
    %10 = vector.broadcast %cst_3 : f32 to vector<16x1xf32>
    %11 = arith.divf %9, %10 : vector<16x1xf32>
    %cst_4 = arith.constant 9.99999974E-6 : f32
    %12 = vector.broadcast %cst_4 : f32 to vector<16x1xf32>
    %13 = arith.addf %11, %12 : vector<16x1xf32>
    %14 = math.rsqrt %13 : vector<16x1xf32>
    %15 = vector.broadcast %14 : vector<16x1xf32> to vector<16x32xf32>
    %16 = arith.mulf %6, %15 : vector<16x32xf32>
    %c0_5 = arith.constant 0 : index
    %c0_6 = arith.constant 0 : index
    %17 = vector.load %arg2[%c0_5, %c0_6] : memref<1x32xf32, #tpu.memory_space<vmem>>, vector<1x32xf32>
    %18 = vector.broadcast %17 : vector<1x32xf32> to vector<16x32xf32>
    %19 = arith.mulf %16, %18 : vector<16x32xf32>
    %c0_7 = arith.constant 0 : index
    %c0_8 = arith.constant 0 : index
    %20 = vector.load %arg3[%c0_7, %c0_8] : memref<1x32xf32, #tpu.memory_space<vmem>>, vector<1x32xf32>
    %21 = vector.broadcast %20 : vector<1x32xf32> to vector<16x32xf32>
    %22 = arith.addf %19, %21 : vector<16x32xf32>
    %c0_9 = arith.constant 0 : index
    %c0_10 = arith.constant 0 : index
    %23 = vector.load %arg4[%c0_9, %c0_10] : memref<32x128xf32, #tpu.memory_space<vmem>>, vector<32x128xf32>
    %cst_11 = arith.constant dense<0.000000e+00> : vector<16x128xf32>
    %24 = tpu.matmul %22, %23, %cst_11 {dimension_numbers = #tpu.dot_dimension_numbers<[1], [0], [0], [1], [0, 0, 1, 1], [], []>} : vector<16x32xf32>, vector<32x128xf32>, vector<16x128xf32> -> vector<16x128xf32>
    %c0_12 = arith.constant 0 : index
    %c0_13 = arith.constant 0 : index
    %25 = vector.load %arg5[%c0_12, %c0_13] : memref<1x128xf32, #tpu.memory_space<vmem>>, vector<1x128xf32>
    %26 = vector.broadcast %25 : vector<1x128xf32> to vector<16x128xf32>
    %27 = arith.addf %24, %26 : vector<16x128xf32>
    %cst_14 = arith.constant 0.000000e+00 : f32
    %28 = vector.broadcast %cst_14 : f32 to vector<16x128xf32>
    %29 = arith.maximumf %27, %28 : vector<16x128xf32>
    %c0_15 = arith.constant 0 : index
    %c0_16 = arith.constant 0 : index
    %30 = vector.load %arg6[%c0_15, %c0_16] : memref<128x32xf32, #tpu.memory_space<vmem>>, vector<128x32xf32>
    %cst_17 = arith.constant dense<0.000000e+00> : vector<16x32xf32>
    %31 = tpu.matmul %29, %30, %cst_17 {dimension_numbers = #tpu.dot_dimension_numbers<[1], [0], [0], [1], [0, 0, 1, 1], [], []>} : vector<16x128xf32>, vector<128x32xf32>, vector<16x32xf32> -> vector<16x32xf32>
    %c0_18 = arith.constant 0 : index
    %c0_19 = arith.constant 0 : index
    %32 = vector.load %arg7[%c0_18, %c0_19] : memref<1x32xf32, #tpu.memory_space<vmem>>, vector<1x32xf32>
    %33 = vector.broadcast %32 : vector<1x32xf32> to vector<16x32xf32>
    %34 = arith.addf %31, %33 : vector<16x32xf32>
    %cst_20 = arith.constant dense<0.000000e+00> : vector<16xf32>
    %35 = vector.multi_reduction <add>, %34, %cst_20 [1] : vector<16x32xf32> to vector<16xf32>
    %36 = vector.shape_cast %35 : vector<16xf32> to vector<16x1xf32>
    %cst_21 = arith.constant 3.200000e+01 : f32
    %37 = vector.broadcast %cst_21 : f32 to vector<16x1xf32>
    %38 = arith.divf %36, %37 : vector<16x1xf32>
    %39 = vector.broadcast %38 : vector<16x1xf32> to vector<16x32xf32>
    %40 = arith.subf %34, %39 : vector<16x32xf32>
    %41 = arith.mulf %40, %40 : vector<16x32xf32>
    %cst_22 = arith.constant dense<0.000000e+00> : vector<16xf32>
    %42 = vector.multi_reduction <add>, %41, %cst_22 [1] : vector<16x32xf32> to vector<16xf32>
    %43 = vector.shape_cast %42 : vector<16xf32> to vector<16x1xf32>
    %cst_23 = arith.constant 3.200000e+01 : f32
    %44 = vector.broadcast %cst_23 : f32 to vector<16x1xf32>
    %45 = arith.divf %43, %44 : vector<16x1xf32>
    %cst_24 = arith.constant 9.99999974E-6 : f32
    %46 = vector.broadcast %cst_24 : f32 to vector<16x1xf32>
    %47 = arith.addf %45, %46 : vector<16x1xf32>
    %48 = math.rsqrt %47 : vector<16x1xf32>
    %49 = vector.broadcast %48 : vector<16x1xf32> to vector<16x32xf32>
    %50 = arith.mulf %40, %49 : vector<16x32xf32>
    %c0_25 = arith.constant 0 : index
    %c0_26 = arith.constant 0 : index
    %51 = vector.load %arg8[%c0_25, %c0_26] : memref<1x32xf32, #tpu.memory_space<vmem>>, vector<1x32xf32>
    %52 = vector.broadcast %51 : vector<1x32xf32> to vector<16x32xf32>
    %53 = arith.mulf %50, %52 : vector<16x32xf32>
    %c0_27 = arith.constant 0 : index
    %c0_28 = arith.constant 0 : index
    %54 = vector.load %arg9[%c0_27, %c0_28] : memref<1x32xf32, #tpu.memory_space<vmem>>, vector<1x32xf32>
    %55 = vector.broadcast %54 : vector<1x32xf32> to vector<16x32xf32>
    %56 = arith.addf %53, %55 : vector<16x32xf32>
    %57 = arith.addf %56, %0 : vector<16x32xf32>
    %c0_29 = arith.constant 0 : index
    %c0_30 = arith.constant 0 : index
    %58 = vector.load %arg10[%c0_29, %c0_30] : memref<16x32xf32, #tpu.memory_space<vmem>>, vector<16x32xf32>
    tpu.vector_store %arg10[%c0_29, %c0_30], %57 {strides = array<i32>} : memref<16x32xf32, #tpu.memory_space<vmem>>, vector<16x32xf32>,
    return
  }
  func.func @transform_0(%arg0: i32) -> (i32, i32) {
    %c0_i32 = arith.constant 0 : i32
    %c0_i32_0 = arith.constant 0 : i32
    return %arg0, %c0_i32 : i32, i32
  }
  func.func @transform_1(%arg0: i32) -> (i32, i32) {
    %c0_i32 = arith.constant 0 : i32
    %c0_i32_0 = arith.constant 0 : i32
    %c0_i32_1 = arith.constant 0 : i32
    return %c0_i32, %c0_i32_0 : i32, i32
  }
  func.func @transform_2(%arg0: i32) -> (i32, i32) {
    %c0_i32 = arith.constant 0 : i32
    %c0_i32_0 = arith.constant 0 : i32
    %c0_i32_1 = arith.constant 0 : i32
    return %c0_i32, %c0_i32_0 : i32, i32
  }
  func.func @transform_3(%arg0: i32) -> (i32, i32) {
    %c0_i32 = arith.constant 0 : i32
    %c0_i32_0 = arith.constant 0 : i32
    %c0_i32_1 = arith.constant 0 : i32
    return %c0_i32, %c0_i32_0 : i32, i32
  }
  func.func @transform_4(%arg0: i32) -> (i32, i32) {
    %c0_i32 = arith.constant 0 : i32
    %c0_i32_0 = arith.constant 0 : i32
    %c0_i32_1 = arith.constant 0 : i32
    return %c0_i32, %c0_i32_0 : i32, i32
  }
  func.func @transform_5(%arg0: i32) -> (i32, i32) {
    %c0_i32 = arith.constant 0 : i32
    %c0_i32_0 = arith.constant 0 : i32
    %c0_i32_1 = arith.constant 0 : i32
    return %c0_i32, %c0_i32_0 : i32, i32
  }
  func.func @transform_6(%arg0: i32) -> (i32, i32) {
    %c0_i32 = arith.constant 0 : i32
    %c0_i32_0 = arith.constant 0 : i32
    %c0_i32_1 = arith.constant 0 : i32
    return %c0_i32, %c0_i32_0 : i32, i32
  }
  func.func @transform_7(%arg0: i32) -> (i32, i32) {
    %c0_i32 = arith.constant 0 : i32
    %c0_i32_0 = arith.constant 0 : i32
    %c0_i32_1 = arith.constant 0 : i32
    return %c0_i32, %c0_i32_0 : i32, i32
  }
  func.func @transform_8(%arg0: i32) -> (i32, i32) {
    %c0_i32 = arith.constant 0 : i32
    %c0_i32_0 = arith.constant 0 : i32
    %c0_i32_1 = arith.constant 0 : i32
    return %c0_i32, %c0_i32_0 : i32, i32
  }
  func.func @transform_9(%arg0: i32) -> (i32, i32) {
    %c0_i32 = arith.constant 0 : i32
    %c0_i32_0 = arith.constant 0 : i32
    return %arg0, %c0_i32 : i32, i32
  }
}

</mosaic_0001>

<bundles_post_ra>
// kernel: adapter_controller_forward.1
= control target key start
LH: loop header
LB: loop body
LE: loop exit
PB: predicated region body
PF: predicated region fallthrough
CT: control target
= control target key end

     0   :  { %vm34_vm0 = vcmask 261120   ;;  %v279_v4 = vmov 32.0   ;;  %s462_s0 = inlined_call_operand.vmem [shape: f32[16,32], index: 0, kind: input, shape index: {}, may-alias: {0,9}]   ;;  %s463_s1 = inlined_call_operand.vmem [shape: f32[1,32], index: 1, kind: input, shape index: {}]   ;;  %s464_s2 = inlined_call_operand.vmem [shape: f32[1,32], index: 2, kind: input, shape index: {}]   ;;  %s465_s4 = inlined_call_operand.vmem [shape: f32[1,128], index: 4, kind: input, shape index: {}]   ;;  %s466_s3 = inlined_call_operand.vmem [shape: f32[32,128], index: 3, kind: input, shape index: {}]   ;;  %s467_s5 = inlined_call_operand.vmem [shape: f32[128,32], index: 5, kind: input, shape index: {}]   ;;  %s468_s6 = inlined_call_operand.vmem [shape: f32[1,32], index: 6, kind: input, shape index: {}]   ;;  %s469_s7 = inlined_call_operand.vmem [shape: f32[1,32], index: 7, kind: input, shape index: {}]   ;;  %s470_s8 = inlined_call_operand.vmem [shape: f32[1,32], index: 8, kind: input, shape index: {}]   ;;  %s471_s9 = inlined_call_operand.vmem [shape: f32[16,32], index: 9, kind: output, shape index: {}, may-alias: {0,9}]  }
   0x1   :  { %v333_v0 = vld [vmem:[%s462_s0] sm:$0xff]  ;;  %v340_v2 = vld [vmem:[%s462_s0 + $0x8] sm:$0xff]  ;;  %269 = vrcp.f32 %v279_v4  ;;  %v101_v21 = vld [vmem:[%s466_s3 + $0x18] sm:$0xff] }
   0x2   :  { %v35_v1 = vsel %vm34_vm0, %v333_v0, 0.0  ;;  %v38_v3 = vsel %vm34_vm0, %v340_v2, 0.0  ;;  %124 = vmatpush.msra.mxu0 %v101_v21  ;;  %v100_v22 = vld [vmem:[%s466_s3 + $0x10] sm:$0xff]  ;;  %v99_v23 = vld [vmem:[%s466_s3 + $0x8] sm:$0xff]  ;;  %v98_v24 = vld [vmem:[%s466_s3] sm:$0xff] }
   0x3   :  { %36 = vadd.xlane.f32.xlu0 %v35_v1  ;;  %v152_v28 = vld [vmem:[%s467_s5 + $0x78] sm:$0xff]  ;;  %v151_v29 = vld [vmem:[%s467_s5 + $0x70] sm:$0xff]  ;;  %v150_v30 = vld [vmem:[%s467_s5 + $0x68] sm:$0xff] }
   0x4   :  { %125 = vmatpush.msra.mxu0 %v100_v22  ;;  %157 = vmatpush.msra.mxu1 %v152_v28  ;;  %v149_v33 = vld [vmem:[%s467_s5 + $0x60] sm:$0xff]  ;;  %v148_v36 = vld [vmem:[%s467_s5 + $0x58] sm:$0xff]  ;;  %v147_v38 = vld [vmem:[%s467_s5 + $0x50] sm:$0xff] }
   0x5   :  { %246 = vmatpush.msra.mxu2 %v152_v28  ;;  %v146_v40 = vld [vmem:[%s467_s5 + $0x48] sm:$0xff]  ;;  %v145_v42 = vld [vmem:[%s467_s5 + $0x40] sm:$0xff]  ;;  %v144_v45 = vld [vmem:[%s467_s5 + $0x38] sm:$0xff] }
   0x6   :  { %126 = vmatpush.msra.mxu0 %v99_v23  ;;  %158 = vmatpush.msra.mxu1 %v151_v29  ;;  %v263_v48 = vld [vmem:[%s463_s1] ss:$0 sm:$0xff]  ;;  %v143_v49 = vld [vmem:[%s467_s5 + $0x30] sm:$0xff]  ;;  %v142_v54 = vld [vmem:[%s467_s5 + $0x28] sm:$0xff] }
   0x7   :  { %v270_v5 = vpop.eup %269  ;;  %247 = vmatpush.msra.mxu2 %v151_v29  ;;  %v264_v53 = vld [vmem:[%s464_s2] ss:$0 sm:$0xff]  ;;  %v140_v60 = vld [vmem:[%s467_s5 + $0x18] sm:$0xff]  ;;  %v139_v4 = vld [vmem:[%s467_s5 + $0x10] sm:$0xff] }
   0x8   :  { %v42_v6 = vmul.f32 32.0, %v270_v5  ;;  %vm46_vm1 = vweird.f32 %v270_v5  ;;  %127 = vmatpush.msra.mxu0 %v98_v24  ;;  %159 = vmatpush.msra.mxu1 %v150_v30  ;;  %v141_v57 = vld [vmem:[%s467_s5 + $0x20] sm:$0xff] }
   0x9   :  { %248 = vmatpush.msra.mxu2 %v150_v30 }
   0xa   :  { %v43_v7 = vsub.f32 1.0, %v42_v6  ;;  %160 = vmatpush.msra.mxu1 %v149_v33  ;;  %v137_v6 = vld [vmem:[%s467_s5] sm:$0xff] }
   0xb   :  { %39 = vadd.xlane.f32.xlu0 %v38_v3  ;;  %249 = vmatpush.msra.mxu2 %v149_v33 }
   0xc   :  { %v44_v8 = vmul.f32 %v270_v5, %v43_v7  ;;  %161 = vmatpush.msra.mxu1 %v148_v36  ;;  %v265_v7 = vld [vmem:[%s465_s4] ss:$0 sm:$0xff] }
   0xd   :  { %250 = vmatpush.msra.mxu2 %v148_v36 }
   0xe   :  { %v45_v9 = vadd.f32 %v270_v5, %v44_v8  ;;  %162 = vmatpush.msra.mxu1 %v147_v38 }
   0xf   :  { %251 = vmatpush.msra.mxu2 %v147_v38 }
  0x10   :  { %v344_v10 = vsel %vm46_vm1, %v270_v5, %v45_v9  ;;  %163 = vmatpush.msra.mxu1 %v146_v40  ;;  %v138_v5 = vld [vmem:[%s467_s5 + $0x8] sm:$0xff] }
  0x11   :  { %252 = vmatpush.msra.mxu2 %v146_v40 }
  0x12   :  { %164 = vmatpush.msra.mxu1 %v145_v42 }
  0x13   :  { %253 = vmatpush.msra.mxu2 %v145_v42 }
  0x14   :  { %165 = vmatpush.msra.mxu1 %v144_v45 }
  0x15   :  { %254 = vmatpush.msra.mxu2 %v144_v45 }
  0x16   :  { %166 = vmatpush.msra.mxu1 %v143_v49 }
  0x17   :  { %255 = vmatpush.msra.mxu2 %v143_v49 }
  0x18   :  { %167 = vmatpush.msra.mxu1 %v142_v54 }
  0x19   :  { %256 = vmatpush.msra.mxu2 %v142_v54 }
  0x1a   :  { %168 = vmatpush.msra.mxu1 %v141_v57 }
  0x1b   :  { %257 = vmatpush.msra.mxu2 %v141_v57 }
  0x1c   :  { %169 = vmatpush.msra.mxu1 %v140_v60 }
  0x1d   :  { %258 = vmatpush.msra.mxu2 %v140_v60 }
  0x1e   :  { %170 = vmatpush.msra.mxu1 %v139_v4 }
  0x1f   :  { %259 = vmatpush.msra.mxu2 %v139_v4 }
  0x20   :  { %171 = vmatpush.msra.mxu1 %v138_v5 }
  0x21   :  { %260 = vmatpush.msra.mxu2 %v138_v5 }
  0x22   :  { %172 = vmatpush.msra.mxu1 %v137_v6 }
  0x23   :  { %261 = vmatpush.msra.mxu2 %v137_v6 }
  0x76   :  { %v37_v11 = vpop.xlane.xlu0 %36 }
  0x77   :  { %v48_v12 = vmul.f32 %v344_v10, %v37_v11 }
  0x79   :  { %v348_v13 = vsub.f32 %v333_v0, %v48_v12 }
  0x7b   :  { %v52_v14 = vmul.f32 %v348_v13, %v348_v13 }
  0x7d   :  { %v54_v15 = vsel %vm34_vm0, %v52_v14, 0.0 }
  0x7e   :  { %55 = vadd.xlane.f32.xlu1 %v54_v15  ;;  %v40_v16 = vpop.xlane.xlu0 %39  ;;  %v266_v15 = vld [vmem:[%s468_s6] ss:$0 sm:$0xff] }
  0x7f   :  { %v49_v17 = vmul.f32 %v344_v10, %v40_v16 }
  0x81   :  { %v355_v18 = vsub.f32 %v340_v2, %v49_v17 }
  0x83   :  { %v53_v19 = vmul.f32 %v355_v18, %v355_v18 }
  0x85   :  { %v57_v20 = vsel %vm34_vm0, %v53_v19, 0.0 }
  0x86   :  { %58 = vadd.xlane.f32.xlu1 %v57_v20 }
  0xf1   :  { %v56_v25 = vpop.xlane.xlu1 %55 }
  0xf2   :  { %v60_v26 = vmul.f32 %v56_v25, %v344_v10 }
  0xf4   :  { %v62_v27 = vadd.f32 1e-05, %v60_v26 }
  0xf6   :  { %271 = vrsqrt.f32 %v62_v27  ;;  %vm70_vm3 = vweird.f32 %v62_v27 }
  0xf9   :  { %v59_v31 = vpop.xlane.xlu1 %58 }
  0xfa   :  { %v61_v32 = vmul.f32 %v59_v31, %v344_v10 }
  0xfc   :  { %v272_v34 = vpop.eup %271  ;;  %v63_v35 = vadd.f32 1e-05, %v61_v32 }
  0xfd   :  { %v65_v37 = vmul.f32 %v272_v34, %v62_v27  ;;  %vm71_vm2 = vweird.f32 %v272_v34 }
  0xfe   :  { %273 = vrsqrt.f32 %v63_v35  ;;  %vm72_vm4 = vmor %vm70_vm3, %vm71_vm2  ;;  %vm80_vm6 = vweird.f32 %v63_v35 }
  0xff   :  { %v66_v39 = vmul.f32 %v272_v34, %v65_v37 }
 0x101   :  { %v67_v41 = vmul.f32 0.5, %v66_v39 }
 0x103   :  { %v68_v43 = vsub.f32 1.5, %v67_v41 }
 0x104   :  { %v274_v44 = vpop.eup %273 }
 0x105   :  { %v69_v46 = vmul.f32 %v272_v34, %v68_v43  ;;  %v75_v47 = vmul.f32 %v274_v44, %v63_v35  ;;  %vm81_vm5 = vweird.f32 %v274_v44 }
 0x106   :  { %vm82_vm7 = vmor %vm80_vm6, %vm81_vm5 }
 0x107   :  { %v73_v50 = vsel %vm72_vm4, %v272_v34, %v69_v46  ;;  %v76_v51 = vmul.f32 %v274_v44, %v75_v47  ;;  %v268_v46 = vld [vmem:[%s470_s8] ss:$0 sm:$0xff] }
 0x108   :  { %v84_v52 = vmul.f32 %v73_v50, %v348_v13 }
 0x109   :  { %v77_v55 = vmul.f32 0.5, %v76_v51 }
 0x10a   :  { %v90_v56 = vmul.f32 %v263_v48, %v84_v52 }
 0x10b   :  { %v78_v58 = vsub.f32 1.5, %v77_v55 }
 0x10c   :  { %v96_v59 = vadd.f32 %v264_v53, %v90_v56 }
 0x10d   :  { %v79_v61 = vmul.f32 %v274_v44, %v78_v58 }
 0x10e   :  { %244 = vmatmul.msk.f32.vlgmr.msra.gmra.mxu0 %vm34_vm0, %v96_v59 }
 0x10f   :  { %v83_v62 = vsel %vm82_vm7, %v274_v44, %v79_v61  ;;  %v267_v44 = vld [vmem:[%s469_s7] ss:$0 sm:$0xff] }
 0x110   :  { %v85_v63 = vmul.f32 %v83_v62, %v355_v18 }
 0x112   :  { %v91_v1 = vmul.f32 %v263_v48, %v85_v63 }
 0x114   :  { %v97_v3 = vadd.f32 %v264_v53, %v91_v1 }
 0x116   :  { %245 = vmatmul.msk.f32.gmra.mxu0 %vm34_vm0, %v97_v3 }
 0x18b   :  { %v129_v8 = vpop.f32.mrf.mxu0 }
 0x18c   :  { %v130_v9 = vadd.f32 %v265_v7, %v129_v8 }
 0x18e   :  { %v135_v11 = vmax.f32 %v130_v9, 0.0 }
 0x190   :  { %173 = vmatmul.f32.vlgmr.msra.gmra.mxu1 %v135_v11 }
 0x193   :  { %v132_v12 = vpop.f32.mrf.mxu0 }
 0x194   :  { %v133_v13 = vadd.f32 %v265_v7, %v132_v12 }
 0x196   :  { %v136_v14 = vmax.f32 %v133_v13, 0.0 }
 0x198   :  { %176 = vmatmul.f32.vlgmr.msra.gmra.mxu2 %v136_v14 }
 0x20d   :  { %v174_v16 = vpop.f32.mrf.mxu1 }
 0x20e   :  { %v175_v17 = vadd.f32 %v266_v15, %v174_v16 }
 0x210   :  { %v180_v18 = vsel %vm34_vm0, %v175_v17, 0.0 }
 0x211   :  { %181 = vadd.xlane.f32.xlu2 %v180_v18 }
 0x21b   :  { %v177_v19 = vpop.f32.mrf.mxu2 }
 0x21c   :  { %v178_v20 = vadd.f32 %v266_v15, %v177_v19 }
 0x21e   :  { %v183_v21 = vsel %vm34_vm0, %v178_v20, 0.0 }
 0x21f   :  { %184 = vadd.xlane.f32.xlu2 %v183_v21 }
 0x284   :  { %v182_v22 = vpop.xlane.xlu2 %181 }
 0x285   :  { %v186_v23 = vmul.f32 %v182_v22, %v344_v10 }
 0x287   :  { %v188_v24 = vsub.f32 %v175_v17, %v186_v23 }
 0x289   :  { %v190_v25 = vmul.f32 %v188_v24, %v188_v24 }
 0x28b   :  { %v192_v26 = vsel %vm34_vm0, %v190_v25, 0.0 }
 0x28c   :  { %193 = vadd.xlane.f32.xlu0 %v192_v26 }
 0x292   :  { %v185_v27 = vpop.xlane.xlu2 %184 }
 0x293   :  { %v187_v28 = vmul.f32 %v185_v27, %v344_v10 }
 0x295   :  { %v189_v29 = vsub.f32 %v178_v20, %v187_v28 }
 0x297   :  { %v191_v30 = vmul.f32 %v189_v29, %v189_v29 }
 0x299   :  { %v195_v31 = vsel %vm34_vm0, %v191_v30, 0.0 }
 0x29a   :  { %196 = vadd.xlane.f32.xlu1 %v195_v31 }
 0x2ff   :  { %v194_v32 = vpop.xlane.xlu0 %193 }
 0x300   :  { %v198_v33 = vmul.f32 %v194_v32, %v344_v10 }
 0x302   :  { %v200_v34 = vadd.f32 1e-05, %v198_v33 }
 0x304   :  { %275 = vrsqrt.f32 %v200_v34  ;;  %vm208_vm9 = vweird.f32 %v200_v34 }
 0x30a   :  { %v276_v35 = vpop.eup %275 }
 0x30b   :  { %v203_v36 = vmul.f32 %v276_v35, %v200_v34  ;;  %vm209_vm8 = vweird.f32 %v276_v35 }
 0x30c   :  { %vm210_vm10 = vmor %vm208_vm9, %vm209_vm8 }
 0x30d   :  { %v204_v37 = vmul.f32 %v276_v35, %v203_v36  ;;  %v197_v38 = vpop.xlane.xlu1 %196 }
 0x30e   :  { %v199_v39 = vmul.f32 %v197_v38, %v344_v10 }
 0x30f   :  { %v205_v40 = vmul.f32 0.5, %v204_v37 }
 0x310   :  { %v201_v41 = vadd.f32 1e-05, %v199_v39 }
 0x311   :  { %v206_v42 = vsub.f32 1.5, %v205_v40 }
 0x312   :  { %277 = vrsqrt.f32 %v201_v41  ;;  %vm218_vm12 = vweird.f32 %v201_v41 }
 0x313   :  { %v207_v43 = vmul.f32 %v276_v35, %v206_v42 }
 0x315   :  { %v211_v45 = vsel %vm210_vm10, %v276_v35, %v207_v43 }
 0x316   :  { %v222_v47 = vmul.f32 %v211_v45, %v188_v24 }
 0x318   :  { %v278_v48 = vpop.eup %277  ;;  %v228_v10 = vmul.f32 %v267_v44, %v222_v47 }
 0x319   :  { %v213_v49 = vmul.f32 %v278_v48, %v201_v41  ;;  %vm219_vm11 = vweird.f32 %v278_v48 }
 0x31a   :  { %v234_v50 = vadd.f32 %v268_v46, %v228_v10  ;;  %vm220_vm13 = vmor %vm218_vm12, %vm219_vm11 }
 0x31b   :  { %v214_v51 = vmul.f32 %v278_v48, %v213_v49 }
 0x31c   :  { %v236_v52 = vadd.f32 %v234_v50, %v333_v0 }
 0x31d   :  { %v215_v53 = vmul.f32 0.5, %v214_v51 }
 0x31e   :  { %238 = vst.msk [vmem:[%s471_s9] sm:$0xff] %vm34_vm0, %v236_v52 }
 0x31f   :  { %v216_v54 = vsub.f32 1.5, %v215_v53 }
 0x321   :  { %v217_v55 = vmul.f32 %v278_v48, %v216_v54 }
 0x323   :  { %v221_v56 = vsel %vm220_vm13, %v278_v48, %v217_v55 }
 0x324   :  { %v223_v57 = vmul.f32 %v221_v56, %v189_v29 }
 0x326   :  { %v229_v58 = vmul.f32 %v267_v44, %v223_v57 }
 0x328   :  { %v235_v59 = vadd.f32 %v268_v46, %v229_v58 }
 0x32a   :  { %v237_v60 = vadd.f32 %v235_v59, %v340_v2 }
 0x32c   :  { %239 = vst.msk [vmem:[%s471_s9 + $0x8] sm:$0xff] %vm34_vm0, %v237_v60 }

</bundles_post_ra>
